<compile_context>
chip_gen: v6e
topology: v6e:2x2x1
jax: 0.10.0
libtpu: 0.0.40
codegen_flags: <defaults>
</compile_context>

<pallas_src>
from functools import partial
import math

import jax
import jax.numpy as jnp
from jax.experimental import pallas as pl
from jax.experimental.pallas import tpu as pltpu

LANE = 128       # feature axes padded to multiples of this (lane-dense)
NODE_PAD = 128   # node axis padded to multiples of this (A_hat lane dim)

_VMEM = pl.BlockSpec(memory_space=pltpu.MemorySpace.VMEM)


def _round_up(x, m):
    return max(m, ((x + m - 1) // m) * m)


def _apply_act(z, activation):
    if activation == "relu":
        return jnp.maximum(z, 0.0)
    if activation == "tanh":
        return jnp.tanh(z)
    return z  # "none"


# ----------------------------- fused Pallas kernel ---------------------------


def _make_fused_kernel(depth, feat_dims, activation, use_aggregation):
    """Build a kernel that runs the whole forward on VMEM-resident tiles.

    Ref layout (all zero-padded; bf16 matmul operands, f32 biases):
      a_ref              : (Np, Np)            bf16 normalized adjacency
      h_ref              : (Np, F0p)           bf16 input node features
      w_refs[l]          : (Fin_p[l], Fout_p[l]) bf16 per-layer weight
      b_refs[l]          : (1, Fout_p[l])      f32 per-layer bias
      [aggregation only]
      mask_ref           : (Np, 1)             f32, 1/N on real rows, 0 on pad
      aw0_ref/(ab0_ref)  : (Hp, Hp) bf16 / (1, Hp) f32
      aw1_ref/(ab1_ref)  : (Hp, Op) bf16 / (1, Op) f32
      o_ref              : (1, Op) f32 if aggregation else (Np, Flast_p) f32
    """

    def kernel(*refs):
        a_ref, h_ref = refs[0], refs[1]
        w_refs = refs[2:2 + depth]
        b_refs = refs[2 + depth:2 + 2 * depth]
        if use_aggregation:
            (mask_ref, aw0_ref, ab0_ref, aw1_ref, ab1_ref,
             o_ref) = refs[2 + 2 * depth:]
        else:
            o_ref = refs[2 + 2 * depth]

        a = a_ref[...]          # bf16
        h = h_ref[...]          # bf16

        for idx in range(depth):                     # static depth -> unrolled
            w = w_refs[idx][...]                     # bf16
            b = b_refs[idx][...]                     # f32
            f_in, f_out = feat_dims[idx]
            # Cheaper association: contract the smaller (unpadded) feature dim
            # against the N x N adjacency.  All dots are bf16 x bf16 with f32
            # accumulation.
            if f_out <= f_in:
                z = jnp.dot(
                    a,
                    jnp.dot(h, w, preferred_element_type=jnp.float32
                            ).astype(jnp.bfloat16),
                    preferred_element_type=jnp.float32)
            else:
                z = jnp.dot(
                    jnp.dot(a, h, preferred_element_type=jnp.float32
                            ).astype(jnp.bfloat16),
                    w,
                    preferred_element_type=jnp.float32)
            z = z + b                                # f32 bias add
            if idx < depth - 1 or use_aggregation:
                z = _apply_act(z, activation)        # f32 activation
            h = z.astype(jnp.bfloat16) if idx < depth - 1 else z

        if use_aggregation:
            # dgl.mean_nodes == masked row-sum (XLU) with 1/N mask; mask is 0
            # on padded rows so their act(b) garbage never leaks in.
            hm = jnp.sum(h * mask_ref[...], axis=0, keepdims=True)  # f32 (1,Hp)
            z = jnp.dot(hm.astype(jnp.bfloat16), aw0_ref[...],
                        preferred_element_type=jnp.float32) + ab0_ref[...]
            z = _apply_act(z, activation)
            z = jnp.dot(z.astype(jnp.bfloat16), aw1_ref[...],
                        preferred_element_type=jnp.float32) + ab1_ref[...]
            o_ref[...] = z.astype(o_ref.dtype)
        else:
            o_ref[...] = h.astype(o_ref.dtype)

    return kernel


# ------------------------------ JAX wrapper ----------------------------------


def _pad2(x, rows, cols, dtype):
    x = x.astype(dtype)
    return jnp.pad(x, ((0, rows - x.shape[0]), (0, cols - x.shape[1])))


@partial(jax.jit, static_argnames=("activation", "use_aggregation"))
def sequential_forward(a_hat, h, params, activation="relu",
                       use_aggregation=True):
    """Mirror of Sequential.forward (+ optional Aggregation head)."""
    layers = params["layers"]
    depth = len(layers)
    n = a_hat.shape[0]
    n_pad = _round_up(n, NODE_PAD)

    feat_dims = tuple((int(w.shape[0]), int(w.shape[1])) for w, _ in layers)
    # Per-layer padded feature widths; consecutive layers share pads because
    # layer l's in_features == layer l-1's out_features.
    f_pads = [_round_up(int(h.shape[1]), LANE)] + \
             [_round_up(fo, LANE) for _, fo in feat_dims]

    a_p = _pad2(a_hat, n_pad, n_pad, jnp.bfloat16)
    h_p = _pad2(h, n_pad, f_pads[0], jnp.bfloat16)
    w_list = [_pad2(w, f_pads[i], f_pads[i + 1], jnp.bfloat16)
              for i, (w, _) in enumerate(layers)]
    b_list = [_pad2(b, 1, f_pads[i + 1], jnp.float32)
              for i, (_, b) in enumerate(layers)]

    kernel = _make_fused_kernel(depth, feat_dims, activation, use_aggregation)

    args = [a_p, h_p] + w_list + b_list
    if use_aggregation:
        w0, b0, w1, b1 = params["agg"]
        hid_pad = _round_up(int(w0.shape[0]), LANE)
        out_features = int(w1.shape[1])
        out_pad = _round_up(out_features, LANE)
        mask = jnp.zeros((n_pad, 1), jnp.float32).at[:n, :].set(1.0 / n)
        args += [mask,
                 _pad2(w0, hid_pad, hid_pad, jnp.bfloat16),
                 _pad2(b0, 1, hid_pad, jnp.float32),
                 _pad2(w1, hid_pad, out_pad, jnp.bfloat16),
                 _pad2(b1, 1, out_pad, jnp.float32)]
        out_shape = jax.ShapeDtypeStruct((1, out_pad), jnp.float32)
    else:
        out_features = feat_dims[-1][1]
        out_shape = jax.ShapeDtypeStruct((n_pad, f_pads[-1]), jnp.float32)

    # Scoped-VMEM limit sized from the actual resident footprint plus headroom
    # for f32/bf16 intermediates, clamped to v7x's 64 MiB physical VMEM.
    arg_bytes = sum(int(x.size) * x.dtype.itemsize for x in args)
    out_bytes = math.prod(out_shape.shape) * 4
    interm_bytes = n_pad * max(f_pads) * (4 + 2) * 2
    vmem_limit = int(min(64 << 20,
                         max(8 << 20,
                             2 * (arg_bytes + out_bytes) + interm_bytes)))

    out_p = pl.pallas_call(
        kernel,
        out_shape=out_shape,
        in_specs=[_VMEM] * len(args),
        out_specs=_VMEM,
        compiler_params=pltpu.CompilerParams(vmem_limit_bytes=vmem_limit),
    )(*args)

    if use_aggregation:
        return out_p[:, :out_features]
    return out_p[:n, :out_features]


# ------------------------------ graph / params -------------------------------


def build_normalized_adjacency(src, dst, num_nodes):
    """Dense DGL-GraphConv (norm='both') normalized adjacency with self-loops."""
    a = jnp.zeros((num_nodes, num_nodes), jnp.float32)
    a = a.at[dst, src].set(1.0)
    a = jnp.maximum(a, jnp.eye(num_nodes, dtype=jnp.float32))
    deg_in = a.sum(axis=1)     # rows = dst
    deg_out = a.sum(axis=0)    # cols = src
    norm = (deg_in[:, None] * deg_out[None, :]) ** -0.5
    return a * norm


def init_params(key, in_features, hidden_features, out_features, depth,
                use_aggregation=True):
    keys = jax.random.split(key, 2 * depth + 4)
    layers = []
    for idx in range(depth):
        fi = in_features if idx == 0 else hidden_features
        fo = (out_features
              if (idx == depth - 1 and not use_aggregation)
              else hidden_features)
        w = 0.1 * jax.random.normal(keys[2 * idx], (fi, fo), jnp.float32)
        b = 0.01 * jax.random.normal(keys[2 * idx + 1], (1, fo), jnp.float32)
        layers.append((w, b))
    params = {"layers": layers}
    if use_aggregation:
        k0, k1, k2, k3 = keys[-4:]
        params["agg"] = (
            0.01 * jax.random.normal(k0, (hidden_features, hidden_features),
                                     jnp.float32),
            0.01 * jax.random.normal(k1, (1, hidden_features), jnp.float32),
            0.01 * jax.random.normal(k2, (hidden_features, out_features),
                                     jnp.float32),
            0.01 * jax.random.normal(k3, (1, out_features), jnp.float32),
        )
    return params


# ------------------------------ pure-JAX reference ---------------------------


def reference_forward(a_hat, h, params, activation="relu",
                      use_aggregation=True):
    n_layers = len(params["layers"])
    for idx, (w, b) in enumerate(params["layers"]):
        h = a_hat @ h @ w + b
        if idx < n_layers - 1 or use_aggregation:
            h = _apply_act(h, activation)
    if use_aggregation:
        w0, b0, w1, b1 = params["agg"]
        hm = h.mean(axis=0, keepdims=True)
        h = _apply_act(hm @ w0 + b0, activation) @ w1 + b1
    return h


# ----------------------------------- main -------------------------------------

if __name__ == "__main__":
    num_nodes = 8
    in_features, hidden_features, out_features, depth = 16, 32, 16, 3

    key = jax.random.PRNGKey(0)
    k_h, k_p1, k_p2 = jax.random.split(key, 3)

    # small ring graph: 0->1->2->...->7->0
    src = jnp.arange(num_nodes, dtype=jnp.int32)
    dst = (src + 1) % num_nodes
    a_hat = build_normalized_adjacency(src, dst, num_nodes)

    h = jax.random.normal(k_h, (num_nodes, in_features), jnp.float32)

    # bf16 MXU operands (f32 accumulation) vs. the all-f32 reference -> loose
    # but still meaningful tolerance.
    ATOL = 1e-2
    RTOL = 1e-2

    # config 1: GCN stack + Aggregation head, ReLU
    params_agg = init_params(k_p1, in_features, hidden_features, out_features,
                             depth, use_aggregation=True)
    out_agg = jax.block_until_ready(
        sequential_forward(a_hat, h, params_agg,
                           activation="relu", use_aggregation=True))
    ref_agg = reference_forward(a_hat, h, params_agg, "relu", True)
    assert out_agg.shape == (1, out_features), out_agg.shape
    assert jnp.allclose(out_agg, ref_agg, atol=ATOL, rtol=RTOL), (out_agg, ref_agg)

    # config 2: plain GCN stack (no head), Tanh
    params_no = init_params(k_p2, in_features, hidden_features, out_features,
                            depth, use_aggregation=False)
    out_no = jax.block_until_ready(
        sequential_forward(a_hat, h, params_no,
                           activation="tanh", use_aggregation=False))
    ref_no = reference_forward(a_hat, h, params_no, "tanh", False)
    assert out_no.shape == (num_nodes, out_features), out_no.shape
    assert jnp.allclose(out_no, ref_no, atol=ATOL, rtol=RTOL), (out_no, ref_no)

    print("KERNEL_OK")
</pallas_src>

<mosaic_0001>
module attributes {stable_mosaic.version = 11 : i64} {
  func.func @kernel(%arg0: memref<128x128xbf16, #tpu.memory_space<vmem>>, %arg1: memref<128x128xbf16, #tpu.memory_space<vmem>>, %arg2: memref<128x128xbf16, #tpu.memory_space<vmem>>, %arg3: memref<128x128xbf16, #tpu.memory_space<vmem>>, %arg4: memref<128x128xbf16, #tpu.memory_space<vmem>>, %arg5: memref<1x128xf32, #tpu.memory_space<vmem>>, %arg6: memref<1x128xf32, #tpu.memory_space<vmem>>, %arg7: memref<1x128xf32, #tpu.memory_space<vmem>>, %arg8: memref<128x1xf32, #tpu.memory_space<vmem>>, %arg9: memref<128x128xbf16, #tpu.memory_space<vmem>>, %arg10: memref<1x128xf32, #tpu.memory_space<vmem>>, %arg11: memref<128x128xbf16, #tpu.memory_space<vmem>>, %arg12: memref<1x128xf32, #tpu.memory_space<vmem>>, %arg13: memref<1x128xf32, #tpu.memory_space<vmem>>) attributes {dimension_semantics = [], scalar_prefetch = 0 : i64, scratch_operands = 0 : i64, tpu.core_type = #tpu.core_type<tc>} {
    %c0 = arith.constant 0 : index
    %c0_0 = arith.constant 0 : index
    %0 = vector.load %arg0[%c0, %c0_0] : memref<128x128xbf16, #tpu.memory_space<vmem>>, vector<128x128xbf16>
    %c0_1 = arith.constant 0 : index
    %c0_2 = arith.constant 0 : index
    %1 = vector.load %arg1[%c0_1, %c0_2] : memref<128x128xbf16, #tpu.memory_space<vmem>>, vector<128x128xbf16>
    %c0_3 = arith.constant 0 : index
    %c0_4 = arith.constant 0 : index
    %2 = vector.load %arg2[%c0_3, %c0_4] : memref<128x128xbf16, #tpu.memory_space<vmem>>, vector<128x128xbf16>
    %c0_5 = arith.constant 0 : index
    %c0_6 = arith.constant 0 : index
    %3 = vector.load %arg5[%c0_5, %c0_6] : memref<1x128xf32, #tpu.memory_space<vmem>>, vector<1x128xf32>
    %cst = arith.constant dense<0.000000e+00> : vector<128x128xf32>
    %4 = tpu.matmul %0, %1, %cst {dimension_numbers = #tpu.dot_dimension_numbers<[1], [0], [0], [1], [0, 0, 1, 1], [], []>} : vector<128x128xbf16>, vector<128x128xbf16>, vector<128x128xf32> -> vector<128x128xf32>
    %5 = arith.truncf %4 : vector<128x128xf32> to vector<128x128xbf16>
    %cst_7 = arith.constant dense<0.000000e+00> : vector<128x128xf32>
    %6 = tpu.matmul %5, %2, %cst_7 {dimension_numbers = #tpu.dot_dimension_numbers<[1], [0], [0], [1], [0, 0, 1, 1], [], []>} : vector<128x128xbf16>, vector<128x128xbf16>, vector<128x128xf32> -> vector<128x128xf32>
    %7 = vector.broadcast %3 : vector<1x128xf32> to vector<128x128xf32>
    %8 = arith.addf %6, %7 : vector<128x128xf32>
    %cst_8 = arith.constant 0.000000e+00 : f32
    %9 = vector.broadcast %cst_8 : f32 to vector<128x128xf32>
    %10 = arith.maximumf %8, %9 : vector<128x128xf32>
    %11 = arith.truncf %10 : vector<128x128xf32> to vector<128x128xbf16>
    %c0_9 = arith.constant 0 : index
    %c0_10 = arith.constant 0 : index
    %12 = vector.load %arg3[%c0_9, %c0_10] : memref<128x128xbf16, #tpu.memory_space<vmem>>, vector<128x128xbf16>
    %c0_11 = arith.constant 0 : index
    %c0_12 = arith.constant 0 : index
    %13 = vector.load %arg6[%c0_11, %c0_12] : memref<1x128xf32, #tpu.memory_space<vmem>>, vector<1x128xf32>
    %cst_13 = arith.constant dense<0.000000e+00> : vector<128x128xf32>
    %14 = tpu.matmul %11, %12, %cst_13 {dimension_numbers = #tpu.dot_dimension_numbers<[1], [0], [0], [1], [0, 0, 1, 1], [], []>} : vector<128x128xbf16>, vector<128x128xbf16>, vector<128x128xf32> -> vector<128x128xf32>
    %15 = arith.truncf %14 : vector<128x128xf32> to vector<128x128xbf16>
    %cst_14 = arith.constant dense<0.000000e+00> : vector<128x128xf32>
    %16 = tpu.matmul %0, %15, %cst_14 {dimension_numbers = #tpu.dot_dimension_numbers<[1], [0], [0], [1], [0, 0, 1, 1], [], []>} : vector<128x128xbf16>, vector<128x128xbf16>, vector<128x128xf32> -> vector<128x128xf32>
    %17 = vector.broadcast %13 : vector<1x128xf32> to vector<128x128xf32>
    %18 = arith.addf %16, %17 : vector<128x128xf32>
    %cst_15 = arith.constant 0.000000e+00 : f32
    %19 = vector.broadcast %cst_15 : f32 to vector<128x128xf32>
    %20 = arith.maximumf %18, %19 : vector<128x128xf32>
    %21 = arith.truncf %20 : vector<128x128xf32> to vector<128x128xbf16>
    %c0_16 = arith.constant 0 : index
    %c0_17 = arith.constant 0 : index
    %22 = vector.load %arg4[%c0_16, %c0_17] : memref<128x128xbf16, #tpu.memory_space<vmem>>, vector<128x128xbf16>
    %c0_18 = arith.constant 0 : index
    %c0_19 = arith.constant 0 : index
    %23 = vector.load %arg7[%c0_18, %c0_19] : memref<1x128xf32, #tpu.memory_space<vmem>>, vector<1x128xf32>
    %cst_20 = arith.constant dense<0.000000e+00> : vector<128x128xf32>
    %24 = tpu.matmul %21, %22, %cst_20 {dimension_numbers = #tpu.dot_dimension_numbers<[1], [0], [0], [1], [0, 0, 1, 1], [], []>} : vector<128x128xbf16>, vector<128x128xbf16>, vector<128x128xf32> -> vector<128x128xf32>
    %25 = arith.truncf %24 : vector<128x128xf32> to vector<128x128xbf16>
    %cst_21 = arith.constant dense<0.000000e+00> : vector<128x128xf32>
    %26 = tpu.matmul %0, %25, %cst_21 {dimension_numbers = #tpu.dot_dimension_numbers<[1], [0], [0], [1], [0, 0, 1, 1], [], []>} : vector<128x128xbf16>, vector<128x128xbf16>, vector<128x128xf32> -> vector<128x128xf32>
    %27 = vector.broadcast %23 : vector<1x128xf32> to vector<128x128xf32>
    %28 = arith.addf %26, %27 : vector<128x128xf32>
    %cst_22 = arith.constant 0.000000e+00 : f32
    %29 = vector.broadcast %cst_22 : f32 to vector<128x128xf32>
    %30 = arith.maximumf %28, %29 : vector<128x128xf32>
    %c0_23 = arith.constant 0 : index
    %c0_24 = arith.constant 0 : index
    %31 = vector.load %arg8[%c0_23, %c0_24] : memref<128x1xf32, #tpu.memory_space<vmem>>, vector<128x1xf32>
    %32 = vector.broadcast %31 : vector<128x1xf32> to vector<128x128xf32>
    %33 = arith.mulf %30, %32 : vector<128x128xf32>
    %cst_25 = arith.constant dense<0.000000e+00> : vector<128xf32>
    %34 = vector.multi_reduction <add>, %33, %cst_25 [0] : vector<128x128xf32> to vector<128xf32>
    %35 = vector.shape_cast %34 : vector<128xf32> to vector<1x128xf32>
    %36 = arith.truncf %35 : vector<1x128xf32> to vector<1x128xbf16>
    %c0_26 = arith.constant 0 : index
    %c0_27 = arith.constant 0 : index
    %37 = vector.load %arg9[%c0_26, %c0_27] : memref<128x128xbf16, #tpu.memory_space<vmem>>, vector<128x128xbf16>
    %cst_28 = arith.constant dense<0.000000e+00> : vector<1x128xf32>
    %38 = tpu.matmul %36, %37, %cst_28 {dimension_numbers = #tpu.dot_dimension_numbers<[1], [0], [0], [1], [0, 0, 1, 1], [], []>} : vector<1x128xbf16>, vector<128x128xbf16>, vector<1x128xf32> -> vector<1x128xf32>
    %c0_29 = arith.constant 0 : index
    %c0_30 = arith.constant 0 : index
    %39 = vector.load %arg10[%c0_29, %c0_30] : memref<1x128xf32, #tpu.memory_space<vmem>>, vector<1x128xf32>
    %40 = arith.addf %38, %39 : vector<1x128xf32>
    %cst_31 = arith.constant 0.000000e+00 : f32
    %41 = vector.broadcast %cst_31 : f32 to vector<1x128xf32>
    %42 = arith.maximumf %40, %41 : vector<1x128xf32>
    %43 = arith.truncf %42 : vector<1x128xf32> to vector<1x128xbf16>
    %c0_32 = arith.constant 0 : index
    %c0_33 = arith.constant 0 : index
    %44 = vector.load %arg11[%c0_32, %c0_33] : memref<128x128xbf16, #tpu.memory_space<vmem>>, vector<128x128xbf16>
    %cst_34 = arith.constant dense<0.000000e+00> : vector<1x128xf32>
    %45 = tpu.matmul %43, %44, %cst_34 {dimension_numbers = #tpu.dot_dimension_numbers<[1], [0], [0], [1], [0, 0, 1, 1], [], []>} : vector<1x128xbf16>, vector<128x128xbf16>, vector<1x128xf32> -> vector<1x128xf32>
    %c0_35 = arith.constant 0 : index
    %c0_36 = arith.constant 0 : index
    %46 = vector.load %arg12[%c0_35, %c0_36] : memref<1x128xf32, #tpu.memory_space<vmem>>, vector<1x128xf32>
    %47 = arith.addf %45, %46 : vector<1x128xf32>
    %c0_37 = arith.constant 0 : index
    %c0_38 = arith.constant 0 : index
    %48 = vector.load %arg13[%c0_37, %c0_38] : memref<1x128xf32, #tpu.memory_space<vmem>>, vector<1x128xf32>
    tpu.vector_store %arg13[%c0_37, %c0_38], %47 {strides = array<i32>} : memref<1x128xf32, #tpu.memory_space<vmem>>, vector<1x128xf32>,
    return
  }
}

</mosaic_0001>

<bundles_post_ra>
// kernel: sequential_forward.1
= control target key start
LH: loop header
LB: loop body
LE: loop exit
PB: predicated region body
PF: predicated region fallthrough
CT: control target
= control target key end

     0   :  { %s2291_s0 = inlined_call_operand.vmem [shape: bf16[128,128], index: 0, kind: input, shape index: {}]   ;;  %s2292_s1 = inlined_call_operand.vmem [shape: bf16[128,128], index: 1, kind: input, shape index: {}]   ;;  %s2293_s2 = inlined_call_operand.vmem [shape: bf16[128,128], index: 2, kind: input, shape index: {}]   ;;  %s2294_s3 = inlined_call_operand.vmem [shape: bf16[128,128], index: 3, kind: input, shape index: {}]   ;;  %s2295_s4 = inlined_call_operand.vmem [shape: bf16[128,128], index: 4, kind: input, shape index: {}]   ;;  %s2296_s5 = inlined_call_operand.vmem [shape: f32[1,128], index: 5, kind: input, shape index: {}]   ;;  %s2297_s6 = inlined_call_operand.vmem [shape: f32[1,128], index: 6, kind: input, shape index: {}]   ;;  %s2298_s7 = inlined_call_operand.vmem [shape: f32[1,128], index: 7, kind: input, shape index: {}]   ;;  %s2299_s8 = inlined_call_operand.vmem [shape: f32[128,1], index: 8, kind: input, shape index: {}]   ;;  %s2300_s9 = inlined_call_operand.vmem [shape: bf16[128,128], index: 9, kind: input, shape index: {}]   ;;  %s2301_s10 = inlined_call_operand.vmem [shape: f32[1,128], index: 10, kind: input, shape index: {}]   ;;  %s2302_s11 = inlined_call_operand.vmem [shape: bf16[128,128], index: 11, kind: input, shape index: {}]   ;;  %s2303_s12 = inlined_call_operand.vmem [shape: f32[1,128], index: 12, kind: input, shape index: {}]   ;;  %s2304_s13 = inlined_call_operand.hbm [shape: f32[1,128], index: 13, kind: output, shape index: {}]  }
   0x1   :  { %v1829_v0 = vld [vmem:[%s2292_s1 + $0x38] sm:$0xff]   ;;  %v1830_v1 = vld [vmem:[%s2292_s1 + $0x30] sm:$0xff]   ;;  %v1831_v2 = vld [vmem:[%s2292_s1 + $0x28] sm:$0xff]  }
   0x2   :  { %1591 = vmatprep.subr.bf16.mxu0 %v1829_v0  ;;  %v1832_v3 = vld [vmem:[%s2292_s1 + $0x20] sm:$0xff]   ;;  %v1833_v5 = vld [vmem:[%s2292_s1 + $0x18] sm:$0xff]   ;;  %v1834_v6 = vld [vmem:[%s2292_s1 + $0x10] sm:$0xff]  }
   0x3   :  { %1592 = vmatpush3.bf16.msra.mxu0 %v1829_v0  ;;  %v1996_v4 = vld [vmem:[%s2291_s0] sm:$0xff]   ;;  %v1845_v7 = vld [vmem:[%s2293_s2 + $0x38] sm:$0xff]   ;;  %v1846_v8 = vld [vmem:[%s2293_s2 + $0x30] sm:$0xff]  }
   0x4   :  { %1593 = vmatprep.subr.bf16.mxu0 %v1830_v1  ;;  %1607 = vmatprep.mubr.bf16.mxu0 %v1996_v4  ;;  %v1835_v9 = vld [vmem:[%s2292_s1 + $0x8] sm:$0xff]   ;;  %v1836_v11 = vld [vmem:[%s2292_s1] sm:$0xff]   ;;  %v1849_v13 = vld [vmem:[%s2293_s2 + $0x18] sm:$0xff]  }
   0x5   :  { %1623 = vmatprep.subr.bf16.mxu1 %v1845_v7  ;;  %v1847_v10 = vld [vmem:[%s2293_s2 + $0x28] sm:$0xff]   ;;  %v1848_v12 = vld [vmem:[%s2293_s2 + $0x20] sm:$0xff]   ;;  %v2034_v15 = vld [vmem:[%s2291_s0 + $0x10] sm:$0xff]  }
   0x6   :  { %1624 = vmatpush3.bf16.msra.mxu1 %v1845_v7  ;;  %v2029_v14 = vld [vmem:[%s2291_s0 + $0x8] sm:$0xff]   ;;  %v1850_v16 = vld [vmem:[%s2293_s2 + $0x10] sm:$0xff]   ;;  %v2044_v17 = vld [vmem:[%s2291_s0 + $0x18] sm:$0xff]  }
   0x7   :  { %1594 = vmatpush3.bf16.msra.mxu0 %v1830_v1  ;;  %1625 = vmatprep.subr.bf16.mxu1 %v1846_v8  ;;  %v2049_v18 = vld [vmem:[%s2291_s0 + $0x20] sm:$0xff]  }
   0x8   :  { %1595 = vmatprep.subr.bf16.mxu0 %v1831_v2 }
   0xa   :  { %1626 = vmatpush3.bf16.msra.mxu1 %v1846_v8 }
   0xb   :  { %1596 = vmatpush3.bf16.msra.mxu0 %v1831_v2  ;;  %1627 = vmatprep.subr.bf16.mxu1 %v1847_v10 }
   0xc   :  { %1597 = vmatprep.subr.bf16.mxu0 %v1832_v3 }
   0xe   :  { %1628 = vmatpush3.bf16.msra.mxu1 %v1847_v10 }
   0xf   :  { %1598 = vmatpush3.bf16.msra.mxu0 %v1832_v3  ;;  %1629 = vmatprep.subr.bf16.mxu1 %v1848_v12 }
  0x10   :  { %1599 = vmatprep.subr.bf16.mxu0 %v1833_v5 }
  0x12   :  { %1630 = vmatpush3.bf16.msra.mxu1 %v1848_v12 }
  0x13   :  { %1600 = vmatpush3.bf16.msra.mxu0 %v1833_v5  ;;  %1631 = vmatprep.subr.bf16.mxu1 %v1849_v13 }
  0x14   :  { %1601 = vmatprep.subr.bf16.mxu0 %v1834_v6 }
  0x16   :  { %1632 = vmatpush3.bf16.msra.mxu1 %v1849_v13 }
  0x17   :  { %1602 = vmatpush3.bf16.msra.mxu0 %v1834_v6  ;;  %1633 = vmatprep.subr.bf16.mxu1 %v1850_v16 }
  0x18   :  { %1603 = vmatprep.subr.bf16.mxu0 %v1835_v9 }
  0x1a   :  { %1634 = vmatpush3.bf16.msra.mxu1 %v1850_v16 }
  0x1b   :  { %1604 = vmatpush3.bf16.msra.mxu0 %v1835_v9 }
  0x1c   :  { %1605 = vmatprep.subr.bf16.mxu0 %v1836_v11 }
  0x1f   :  { %1606 = vmatpush3.bf16.msra.mxu0 %v1836_v11 }
  0x22   :  { %1608 = vmatmul.mubr.bf16.vlgmr.msra.gmra.mxu0 %v2029_v14 }
  0x23   :  { %1611 = vmatprep.mubr.bf16.mxu0 %v2034_v15 }
  0x2a   :  { %1612 = vmatmul.mubr.bf16.gmra.mxu0 %v2044_v17 }
  0x2b   :  { %1615 = vmatprep.mubr.bf16.mxu0 %v2049_v18 }
  0x2c   :  { %18 = vsyncpa [#allocation3], 0  ;;  %v2056_v19 = vld [vmem:[%s2291_s0 + $0x28] sm:$0xff]   ;;  %v2061_v20 = vld [vmem:[%s2291_s0 + $0x30] sm:$0xff]   ;;  %vm1909_vm0 = vmmov 0   ;;  %s1910_s26 = smov [#allocation2]  }
  0x2d   :  { %v2068_v21 = vld [vmem:[%s2291_s0 + $0x38] sm:$0xff]   ;;  %v1851_v22 = vld [vmem:[%s2293_s2 + $0x8] sm:$0xff]   ;;  %v1852_v23 = vld [vmem:[%s2293_s2] sm:$0xff]   ;;  %s1410_s27 = sshll.u32 %s1910_s26, 4  ;;  %s1411_s27 = int_to_ptr.vmem [resolvable:$true] %s1410_s27 }
  0x2e   :  { %1635 = vmatprep.subr.bf16.mxu1 %v1851_v22  ;;  %v1853_v24 = vld [vmem:[%s2294_s3 + $0x38] sm:$0xff]   ;;  %v1854_v25 = vld [vmem:[%s2294_s3 + $0x30] sm:$0xff]   ;;  %v1855_v26 = vld [vmem:[%s2294_s3 + $0x28] sm:$0xff]   ;;  %p1890_p1 = scmp.lt.s32.totalorder %s1411_s27, %s1411_s27 }
  0x2f   :  { %1636 = vmatpush3.bf16.msra.mxu1 %v1851_v22  ;;  %1655 = vmatprep.subr.bf16.mxu0 %v1853_v24  ;;  %v1856_v27 = vld [vmem:[%s2294_s3 + $0x20] sm:$0xff]   ;;  %v1857_v28 = vld [vmem:[%s2294_s3 + $0x18] sm:$0xff]   ;;  %v1858_v53 = vld [vmem:[%s2294_s3 + $0x10] sm:$0xff]  }
  0x30   :  { %1637 = vmatprep.subr.bf16.mxu1 %v1852_v23  ;;  %1656 = vmatpush3.bf16.msra.mxu0 %v1853_v24  ;;  %v1859_v54 = vld [vmem:[%s2294_s3 + $0x8] sm:$0xff]   ;;  %v1860_v55 = vld [vmem:[%s2294_s3] sm:$0xff]  }
  0x31   :  { %1657 = vmatprep.subr.bf16.mxu0 %v1854_v25  ;;  %v1434_v58 = vld [vmem:[%s2296_s5] ss:$0 sm:$0xff] }
  0x32   :  { %1616 = vmatmul.mubr.bf16.gmra.mxu0 %v2056_v19 }
  0x33   :  { %1619 = vmatprep.mubr.bf16.mxu0 %v2061_v20  ;;  %1638 = vmatpush3.bf16.msra.mxu1 %v1852_v23 }
  0x34   :  { %1658 = vmatpush3.bf16.msra.mxu0 %v1854_v25 }
  0x35   :  { %1659 = vmatprep.subr.bf16.mxu0 %v1855_v26 }
  0x38   :  { %1660 = vmatpush3.bf16.msra.mxu0 %v1855_v26 }
  0x39   :  { %1661 = vmatprep.subr.bf16.mxu0 %v1856_v27 }
  0x3a   :  { %1620 = vmatmul.mubr.bf16.gmra.mxu0 %v2068_v21 }
  0x3c   :  { %1662 = vmatpush3.bf16.msra.mxu0 %v1856_v27 }
  0x3d   :  { %1663 = vmatprep.subr.bf16.mxu0 %v1857_v28 }
  0x40   :  { %1664 = vmatpush3.bf16.msra.mxu0 %v1857_v28 }
  0x41   :  { %1665 = vmatprep.subr.bf16.mxu0 %v1858_v53 }
  0x44   :  { %1666 = vmatpush3.bf16.msra.mxu0 %v1858_v53 }
  0x45   :  { %1667 = vmatprep.subr.bf16.mxu0 %v1859_v54 }
  0x48   :  { %1668 = vmatpush3.bf16.msra.mxu0 %v1859_v54 }
  0x49   :  { %1669 = vmatprep.subr.bf16.mxu0 %v1860_v55 }
  0x4c   :  { %1670 = vmatpush3.bf16.msra.mxu0 %v1860_v55 }
  0xe2   :  { %v1609_v29 = vpop.f32.mrf.mxu0 }
  0xe4   :  { %v225_v30 = vpop.f32.mrf.mxu0 }
  0xe6   :  { %v1610_v31 = vpop.f32.mrf.mxu0 }
  0xe7   :  { %v289_v34 = vpack.c.bf16 %v1610_v31, %v1609_v29 }
  0xe8   :  { %v228_v32 = vpop.f32.mrf.mxu0 }
  0xe9   :  { %v288_v33 = vpack.c.bf16 %v228_v32, %v225_v30 }
  0xea   :  { %v1613_v35 = vpop.f32.mrf.mxu0 }
  0xeb   :  { %1639 = vmatprep.mubr.bf16.mxu1 %v288_v33 }
  0xec   :  { %v241_v36 = vpop.f32.mrf.mxu0  ;;  %1640 = vmatmul.mubr.bf16.vlgmr.msra.gmra.mxu1 %v289_v34 }
  0xee   :  { %v1614_v37 = vpop.f32.mrf.mxu0 }
  0xef   :  { %v291_v40 = vpack.c.bf16 %v1614_v37, %v1613_v35 }
  0xf0   :  { %v244_v38 = vpop.f32.mrf.mxu0 }
  0xf1   :  { %v290_v39 = vpack.c.bf16 %v244_v38, %v241_v36 }
  0xf2   :  { %v1617_v41 = vpop.f32.mrf.mxu0 }
  0xf3   :  { %1643 = vmatprep.mubr.bf16.mxu1 %v290_v39 }
  0xf4   :  { %v257_v42 = vpop.f32.mrf.mxu0  ;;  %1644 = vmatmul.mubr.bf16.gmra.mxu1 %v291_v40 }
  0xf6   :  { %v1618_v43 = vpop.f32.mrf.mxu0 }
  0xf7   :  { %v293_v46 = vpack.c.bf16 %v1618_v43, %v1617_v41 }
  0xf8   :  { %v260_v44 = vpop.f32.mrf.mxu0 }
  0xf9   :  { %v292_v45 = vpack.c.bf16 %v260_v44, %v257_v42 }
  0xfa   :  { %v1621_v47 = vpop.f32.mrf.mxu0 }
  0xfb   :  { %1647 = vmatprep.mubr.bf16.mxu1 %v292_v45 }
  0xfc   :  { %v273_v48 = vpop.f32.mrf.mxu0  ;;  %1648 = vmatmul.mubr.bf16.gmra.mxu1 %v293_v46 }
  0xfe   :  { %v1622_v49 = vpop.f32.mrf.mxu0 }
  0xff   :  { %v295_v52 = vpack.c.bf16 %v1622_v49, %v1621_v47 }
 0x100   :  { %v276_v50 = vpop.f32.mrf.mxu0 }
 0x101   :  { %v294_v51 = vpack.c.bf16 %v276_v50, %v273_v48 }
 0x103   :  { %1651 = vmatprep.mubr.bf16.mxu1 %v294_v51 }
 0x104   :  { %1652 = vmatmul.mubr.bf16.gmra.mxu1 %v295_v52 }
 0x105   :  { %1703 = vmatprep.mubr.bf16.mxu1 %v1996_v4 }
 0x1ac   :  { %v1641_v56 = vpop.f32.mrf.mxu1 }
 0x1ad   :  { %v393_v62 = vadd.f32 %v1641_v56, %v1434_v58 }
 0x1ae   :  { %v384_v57 = vpop.f32.mrf.mxu1 }
 0x1af   :  { %v385_v60 = vadd.f32 %v1434_v58, %v384_v57  ;;  %v449_v6 = vmax.f32 %v393_v62, 0.0  ;;  %v1861_v57 = vld [vmem:[%s2295_s4 + $0x38] sm:$0xff]  }
 0x1b0   :  { %v1642_v59 = vpop.f32.mrf.mxu1  ;;  %1719 = vmatprep.subr.bf16.mxu0 %v1861_v57 }
 0x1b1   :  { %v396_v61 = vadd.f32 %v1642_v59, %v1434_v58  ;;  %v447_v3 = vmax.f32 %v385_v60, 0.0  ;;  %v1862_v59 = vld [vmem:[%s2295_s4 + $0x30] sm:$0xff]   ;;  %v1864_v60 = vld [vmem:[%s2295_s4 + $0x20] sm:$0xff]  }
 0x1b2   :  { %v387_v63 = vpop.f32.mrf.mxu1 }
 0x1b3   :  { %v388_v0 = vadd.f32 %v1434_v58, %v387_v63  ;;  %v450_v1 = vmax.f32 %v396_v61, 0.0  ;;  %v1865_v61 = vld [vmem:[%s2295_s4 + $0x18] sm:$0xff]  }
 0x1b4   :  { %v1645_v2 = vpop.f32.mrf.mxu1 }
 0x1b5   :  { %v448_v5 = vmax.f32 %v388_v0, 0.0  ;;  %v464_v9 = vpack.c.bf16 %v450_v1, %v449_v6  ;;  %v409_v13 = vadd.f32 %v1645_v2, %v1434_v58 }
 0x1b6   :  { %v400_v7 = vpop.f32.mrf.mxu1 }
 0x1b7   :  { %v463_v8 = vpack.c.bf16 %v448_v5, %v447_v3  ;;  %v401_v11 = vadd.f32 %v1434_v58, %v400_v7  ;;  %v453_v27 = vmax.f32 %v409_v13, 0.0 }
 0x1b8   :  { %v1646_v10 = vpop.f32.mrf.mxu1 }
 0x1b9   :  { %v412_v12 = vadd.f32 %v1646_v10, %v1434_v58  ;;  %1671 = vmatprep.mubr.bf16.mxu0 %v463_v8  ;;  %v451_v25 = vmax.f32 %v401_v11, 0.0 }
 0x1ba   :  { %v403_v16 = vpop.f32.mrf.mxu1  ;;  %1672 = vmatmul.mubr.bf16.vlgmr.msra.gmra.mxu0 %v464_v9 }
 0x1bb   :  { %v404_v22 = vadd.f32 %v1434_v58, %v403_v16  ;;  %v454_v23 = vmax.f32 %v412_v12, 0.0  ;;  %1720 = vmatpush3.bf16.msra.mxu0 %v1861_v57 }
 0x1bc   :  { %v1649_v24 = vpop.f32.mrf.mxu1  ;;  %1721 = vmatprep.subr.bf16.mxu0 %v1862_v59 }
 0x1bd   :  { %v452_v26 = vmax.f32 %v404_v22, 0.0  ;;  %v466_v30 = vpack.c.bf16 %v454_v23, %v453_v27  ;;  %v425_v34 = vadd.f32 %v1649_v24, %v1434_v58 }
 0x1be   :  { %v416_v28 = vpop.f32.mrf.mxu1 }
 0x1bf   :  { %v465_v29 = vpack.c.bf16 %v452_v26, %v451_v25  ;;  %v417_v32 = vadd.f32 %v1434_v58, %v416_v28  ;;  %v457_v41 = vmax.f32 %v425_v34, 0.0  ;;  %1722 = vmatpush3.bf16.msra.mxu0 %v1862_v59  ;;  %v1451_v34 = vld [vmem:[%s2297_s6] ss:$0 sm:$0xff] }
 0x1c0   :  { %v1650_v31 = vpop.f32.mrf.mxu1 }
 0x1c1   :  { %v428_v33 = vadd.f32 %v1650_v31, %v1434_v58  ;;  %1675 = vmatprep.mubr.bf16.mxu0 %v465_v29  ;;  %v455_v39 = vmax.f32 %v417_v32, 0.0  ;;  %v1867_v31 = vld [vmem:[%s2295_s4 + $0x8] sm:$0xff]   ;;  %v1868_v32 = vld [vmem:[%s2295_s4] sm:$0xff]  }
 0x1c2   :  { %v419_v35 = vpop.f32.mrf.mxu1  ;;  %1676 = vmatmul.mubr.bf16.gmra.mxu0 %v466_v30  ;;  %v1866_v30 = vld [vmem:[%s2295_s4 + $0x10] sm:$0xff]  }
 0x1c3   :  { %v420_v36 = vadd.f32 %v1434_v58, %v419_v35  ;;  %v458_v37 = vmax.f32 %v428_v33, 0.0 }
 0x1c4   :  { %v1653_v38 = vpop.f32.mrf.mxu1 }
 0x1c5   :  { %v456_v40 = vmax.f32 %v420_v36, 0.0  ;;  %v468_v44 = vpack.c.bf16 %v458_v37, %v457_v41  ;;  %v441_v48 = vadd.f32 %v1653_v38, %v1434_v58 }
 0x1c6   :  { %v432_v42 = vpop.f32.mrf.mxu1 }
 0x1c7   :  { %v467_v43 = vpack.c.bf16 %v456_v40, %v455_v39  ;;  %v433_v46 = vadd.f32 %v1434_v58, %v432_v42  ;;  %v461_v54 = vmax.f32 %v441_v48, 0.0 }
 0x1c8   :  { %v1654_v45 = vpop.f32.mrf.mxu1 }
 0x1c9   :  { %v444_v47 = vadd.f32 %v1654_v45, %v1434_v58  ;;  %1679 = vmatprep.mubr.bf16.mxu0 %v467_v43  ;;  %v459_v52 = vmax.f32 %v433_v46, 0.0 }
 0x1ca   :  { %v435_v49 = vpop.f32.mrf.mxu1  ;;  %1680 = vmatmul.mubr.bf16.gmra.mxu0 %v468_v44 }
 0x1cb   :  { %v436_v50 = vadd.f32 %v1434_v58, %v435_v49  ;;  %v462_v51 = vmax.f32 %v444_v47, 0.0  ;;  %v1863_v58 = vld [vmem:[%s2295_s4 + $0x28] sm:$0xff]  }
 0x1cc   :  { %1723 = vmatprep.subr.bf16.mxu0 %v1863_v58 }
 0x1cd   :  { %v460_v53 = vmax.f32 %v436_v50, 0.0  ;;  %v470_v56 = vpack.c.bf16 %v462_v51, %v461_v54  ;;  %1724 = vmatpush3.bf16.msra.mxu0 %v1863_v58 }
 0x1ce   :  { %1725 = vmatprep.subr.bf16.mxu0 %v1864_v60 }
 0x1cf   :  { %v469_v55 = vpack.c.bf16 %v460_v53, %v459_v52 }
 0x1d1   :  { %1683 = vmatprep.mubr.bf16.mxu0 %v469_v55  ;;  %1726 = vmatpush3.bf16.msra.mxu0 %v1864_v60 }
 0x1d2   :  { %1684 = vmatmul.mubr.bf16.gmra.mxu0 %v470_v56  ;;  %1727 = vmatprep.subr.bf16.mxu0 %v1865_v61 }
 0x1d5   :  { %1728 = vmatpush3.bf16.msra.mxu0 %v1865_v61 }
 0x1d6   :  { %1729 = vmatprep.subr.bf16.mxu0 %v1866_v30 }
 0x1d9   :  { %1730 = vmatpush3.bf16.msra.mxu0 %v1866_v30 }
 0x1da   :  { %1731 = vmatprep.subr.bf16.mxu0 %v1867_v31 }
 0x1dd   :  { %1732 = vmatpush3.bf16.msra.mxu0 %v1867_v31 }
 0x1de   :  { %1733 = vmatprep.subr.bf16.mxu0 %v1868_v32 }
 0x1e1   :  { %1734 = vmatpush3.bf16.msra.mxu0 %v1868_v32 }
 0x27a   :  { %v1673_v62 = vpop.f32.mrf.mxu0 }
 0x27c   :  { %v570_v63 = vpop.f32.mrf.mxu0 }
 0x27e   :  { %v1674_v0 = vpop.f32.mrf.mxu0 }
 0x27f   :  { %v634_v28 = vpack.c.bf16 %v1674_v0, %v1673_v62 }
 0x280   :  { %v573_v1 = vpop.f32.mrf.mxu0 }
 0x281   :  { %v633_v29 = vpack.c.bf16 %v573_v1, %v570_v63 }
 0x282   :  { %v1677_v2 = vpop.f32.mrf.mxu0 }
 0x284   :  { %v586_v3 = vpop.f32.mrf.mxu0 }
 0x286   :  { %v1678_v5 = vpop.f32.mrf.mxu0 }
 0x287   :  { %v636_v26 = vpack.c.bf16 %v1678_v5, %v1677_v2 }
 0x288   :  { %v589_v6 = vpop.f32.mrf.mxu0 }
 0x289   :  { %v635_v27 = vpack.c.bf16 %v589_v6, %v586_v3 }
 0x28a   :  { %v1681_v7 = vpop.f32.mrf.mxu0 }
 0x28c   :  { %v602_v8 = vpop.f32.mrf.mxu0 }
 0x28e   :  { %v1682_v9 = vpop.f32.mrf.mxu0 }
 0x28f   :  { %v638_v24 = vpack.c.bf16 %v1682_v9, %v1681_v7 }
 0x290   :  { %v605_v10 = vpop.f32.mrf.mxu0 }
 0x291   :  { %v637_v25 = vpack.c.bf16 %v605_v10, %v602_v8 }
 0x292   :  { %v1685_v11 = vpop.f32.mrf.mxu0 }
 0x294   :  { %v618_v12 = vpop.f32.mrf.mxu0 }
 0x296   :  { %v1686_v13 = vpop.f32.mrf.mxu0 }
 0x297   :  { %v640_v16 = vpack.c.bf16 %v1686_v13, %v1685_v11 }
 0x298   :  { %v621_v22 = vpop.f32.mrf.mxu0 }
 0x299   :  { %v639_v23 = vpack.c.bf16 %v621_v22, %v618_v12  ;;  %1687 = vmatprep.subr.bf16.mxu1 %v640_v16 }
 0x29a   :  { %1688 = vmatpush3.bf16.msra.mxu1 %v640_v16 }
 0x29b   :  { %1689 = vmatprep.subr.bf16.mxu1 %v639_v23 }
 0x29e   :  { %1690 = vmatpush3.bf16.msra.mxu1 %v639_v23 }
 0x29f   :  { %1691 = vmatprep.subr.bf16.mxu1 %v638_v24 }
 0x2a2   :  { %1692 = vmatpush3.bf16.msra.mxu1 %v638_v24 }
 0x2a3   :  { %1693 = vmatprep.subr.bf16.mxu1 %v637_v25 }
 0x2a6   :  { %1694 = vmatpush3.bf16.msra.mxu1 %v637_v25 }
 0x2a7   :  { %1695 = vmatprep.subr.bf16.mxu1 %v636_v26 }
 0x2aa   :  { %1696 = vmatpush3.bf16.msra.mxu1 %v636_v26 }
 0x2ab   :  { %1697 = vmatprep.subr.bf16.mxu1 %v635_v27 }
 0x2ae   :  { %1698 = vmatpush3.bf16.msra.mxu1 %v635_v27 }
 0x2af   :  { %1699 = vmatprep.subr.bf16.mxu1 %v634_v28 }
 0x2b2   :  { %1700 = vmatpush3.bf16.msra.mxu1 %v634_v28 }
 0x2b3   :  { %1701 = vmatprep.subr.bf16.mxu1 %v633_v29 }
 0x2b6   :  { %1702 = vmatpush3.bf16.msra.mxu1 %v633_v29 }
 0x2b9   :  { %1704 = vmatmul.mubr.bf16.vlgmr.msra.gmra.mxu1 %v2029_v14 }
 0x2ba   :  { %1707 = vmatprep.mubr.bf16.mxu1 %v2034_v15 }
 0x2c1   :  { %1708 = vmatmul.mubr.bf16.gmra.mxu1 %v2044_v17 }
 0x2c2   :  { %1711 = vmatprep.mubr.bf16.mxu1 %v2049_v18 }
 0x2c9   :  { %1712 = vmatmul.mubr.bf16.gmra.mxu1 %v2056_v19 }
 0x2ca   :  { %1715 = vmatprep.mubr.bf16.mxu1 %v2061_v20 }
 0x2d1   :  { %1716 = vmatmul.mubr.bf16.gmra.mxu1 %v2068_v21 }
 0x2d2   :  { %1767 = vmatprep.mubr.bf16.mxu1 %v1996_v4 }
 0x379   :  { %v1705_v33 = vpop.f32.mrf.mxu1 }
 0x37a   :  { %v690_v38 = vadd.f32 %v1705_v33, %v1451_v34  ;;  %v1057_v33 = vld [vmem:[%s2299_s8] sm:$0xff] }
 0x37b   :  { %v681_v4 = vpop.f32.mrf.mxu1 }
 0x37c   :  { %v682_v36 = vadd.f32 %v1451_v34, %v681_v4  ;;  %v746_v45 = vmax.f32 %v690_v38, 0.0  ;;  %v1059_v4 = vld [vmem:[%s2299_s8 + $0x10] sm:$0xff]  ;;  %v1062_v38 = vld [vmem:[%s2299_s8 + $0x28] sm:$0xff] }
 0x37d   :  { %v1706_v35 = vpop.f32.mrf.mxu1 }
 0x37e   :  { %v693_v37 = vadd.f32 %v1706_v35, %v1451_v34  ;;  %v744_v43 = vmax.f32 %v682_v36, 0.0  ;;  %v1907_v35 = vmov 0   ;;  %v1060_v36 = vld [vmem:[%s2299_s8 + $0x18] sm:$0xff] }
 0x37f   :  { %v684_v39 = vpop.f32.mrf.mxu1  ;;  %1827 = vset.pattern.permute.xlu0 %v1907_v35  ;;  %1828 = vset.pattern.permute.xlu1 %v1907_v35 }
 0x380   :  { %v685_v40 = vadd.f32 %v1451_v34, %v684_v39  ;;  %v747_v41 = vmax.f32 %v693_v37, 0.0  ;;  %1075 = vperm.xlu0 %1827, %v1057_v33   ;;  %1085 = vperm.xlu1 %1828, %v1059_v4   ;;  %v1061_v37 = vld [vmem:[%s2299_s8 + $0x20] sm:$0xff]  ;;  %v1063_v39 = vld [vmem:[%s2299_s8 + $0x30] sm:$0xff] }
 0x381   :  { %v1709_v42 = vpop.f32.mrf.mxu1 }
 0x382   :  { %v745_v44 = vmax.f32 %v685_v40, 0.0  ;;  %v761_v48 = vpack.c.bf16 %v747_v41, %v746_v45  ;;  %v706_v52 = vadd.f32 %v1709_v42, %v1451_v34  ;;  %v1064_v40 = vld [vmem:[%s2299_s8 + $0x38] sm:$0xff]  ;;  %v1065_v41 = vld [vmem:[%s2299_s8 + $0x40] sm:$0xff]  ;;  %v1066_v42 = vld [vmem:[%s2299_s8 + $0x48] sm:$0xff] }
 0x383   :  { %v697_v46 = vpop.f32.mrf.mxu1  ;;  %v1069_v45 = vld [vmem:[%s2299_s8 + $0x60] sm:$0xff] }
 0x384   :  { %v760_v47 = vpack.c.bf16 %v745_v44, %v744_v43  ;;  %v698_v50 = vadd.f32 %v1451_v34, %v697_v46  ;;  %v750_v58 = vmax.f32 %v706_v52, 0.0  ;;  %1090 = vperm.xlu1 %1828, %v1060_v36   ;;  %v1067_v43 = vld [vmem:[%s2299_s8 + $0x50] sm:$0xff]  ;;  %v1068_v44 = vld [vmem:[%s2299_s8 + $0x58] sm:$0xff]  ;;  %v1070_v46 = vld [vmem:[%s2299_s8 + $0x68] sm:$0xff] }
 0x385   :  { %v1710_v49 = vpop.f32.mrf.mxu1 }
 0x386   :  { %v709_v51 = vadd.f32 %v1710_v49, %v1451_v34  ;;  %1735 = vmatprep.mubr.bf16.mxu0 %v760_v47  ;;  %v748_v57 = vmax.f32 %v698_v50, 0.0  ;;  %v1071_v47 = vld [vmem:[%s2299_s8 + $0x70] sm:$0xff] }
 0x387   :  { %v700_v53 = vpop.f32.mrf.mxu1  ;;  %1736 = vmatmul.mubr.bf16.vlgmr.msra.gmra.mxu0 %v761_v48  ;;  %v1072_v48 = vld [vmem:[%s2299_s8 + $0x78] sm:$0xff] }
 0x388   :  { %v701_v54 = vadd.f32 %v1451_v34, %v700_v53  ;;  %v751_v55 = vmax.f32 %v709_v51, 0.0  ;;  %1100 = vperm.xlu1 %1828, %v1062_v38  }
 0x389   :  { %v1713_v56 = vpop.f32.mrf.mxu1 }
 0x38a   :  { %v749_v59 = vmax.f32 %v701_v54, 0.0  ;;  %v763_v62 = vpack.c.bf16 %v751_v55, %v750_v58  ;;  %v722_v2 = vadd.f32 %v1713_v56, %v1451_v34 }
 0x38b   :  { %v713_v60 = vpop.f32.mrf.mxu1 }
 0x38c   :  { %v762_v61 = vpack.c.bf16 %v749_v59, %v748_v57  ;;  %v714_v0 = vadd.f32 %v1451_v34, %v713_v60  ;;  %v754_v10 = vmax.f32 %v722_v2, 0.0  ;;  %1110 = vperm.xlu1 %1828, %v1064_v40  }
 0x38d   :  { %v1714_v63 = vpop.f32.mrf.mxu1 }
 0x38e   :  { %v725_v1 = vadd.f32 %v1714_v63, %v1451_v34  ;;  %1739 = vmatprep.mubr.bf16.mxu0 %v762_v61  ;;  %v752_v8 = vmax.f32 %v714_v0, 0.0 }
 0x38f   :  { %v716_v3 = vpop.f32.mrf.mxu1  ;;  %1740 = vmatmul.mubr.bf16.gmra.mxu0 %v763_v62 }
 0x390   :  { %v717_v5 = vadd.f32 %v1451_v34, %v716_v3  ;;  %v755_v6 = vmax.f32 %v725_v1, 0.0  ;;  %1120 = vperm.xlu1 %1828, %v1066_v42  }
 0x391   :  { %v1717_v7 = vpop.f32.mrf.mxu1 }
 0x392   :  { %v753_v9 = vmax.f32 %v717_v5, 0.0  ;;  %v765_v13 = vpack.c.bf16 %v755_v6, %v754_v10  ;;  %v738_v24 = vadd.f32 %v1717_v7, %v1451_v34  ;;  %v1869_v10 = vld [vmem:[%s2300_s9 + $0x38] sm:$0xff]  }
 0x393   :  { %v729_v11 = vpop.f32.mrf.mxu1 }
 0x394   :  { %v764_v12 = vpack.c.bf16 %v753_v9, %v752_v8  ;;  %v730_v22 = vadd.f32 %v1451_v34, %v729_v11  ;;  %v758_v30 = vmax.f32 %v738_v24, 0.0  ;;  %1130 = vperm.xlu1 %1828, %v1068_v44   ;;  %v1908_v11 = vmov 0.0   ;;  %v1882_v24 = vld [vmem:[%s2302_s11 + $0x10] sm:$0xff]  }
 0x395   :  { %v1718_v16 = vpop.f32.mrf.mxu1  ;;  %1783 = vmatprep.subr.bf16.mxu0 %v1908_v11 }
 0x396   :  { %v741_v23 = vadd.f32 %v1718_v16, %v1451_v34  ;;  %1743 = vmatprep.mubr.bf16.mxu0 %v764_v12  ;;  %v756_v28 = vmax.f32 %v730_v22, 0.0  ;;  %1784 = vmatpush3.bf16.msra.mxu0 %v1869_v10  ;;  %v1877_v12 = vld [vmem:[%s2302_s11 + $0x38] sm:$0xff]   ;;  %v1879_v16 = vld [vmem:[%s2302_s11 + $0x28] sm:$0xff]   ;;  %v1880_v22 = vld [vmem:[%s2302_s11 + $0x20] sm:$0xff]  }
 0x397   :  { %v732_v25 = vpop.f32.mrf.mxu1  ;;  %1744 = vmatmul.mubr.bf16.gmra.mxu0 %v765_v13  ;;  %1785 = vmatprep.subr.bf16.mxu0 %v1908_v11  ;;  %v1878_v13 = vld [vmem:[%s2302_s11 + $0x30] sm:$0xff]  }
 0x398   :  { %v733_v26 = vadd.f32 %v1451_v34, %v732_v25  ;;  %v759_v27 = vmax.f32 %v741_v23, 0.0  ;;  %v1058_v34 = vld [vmem:[%s2299_s8 + $0x8] sm:$0xff]  ;;  %1140 = vperm.xlu1 %1828, %v1070_v46   ;;  %v1881_v23 = vld [vmem:[%s2302_s11 + $0x18] sm:$0xff]  }
 0x399   :  { %1080 = vperm.xlu0 %1827, %v1058_v34  }
 0x39a   :  { %v757_v29 = vmax.f32 %v733_v26, 0.0  ;;  %v767_v32 = vpack.c.bf16 %v759_v27, %v758_v30  ;;  %v2257_v30 = vld [vmem:[%s2298_s7] ss:$0 sm:$0xff] }
 0x39c   :  { %v766_v31 = vpack.c.bf16 %v757_v29, %v756_v28  ;;  %1150 = vperm.xlu1 %1828, %v1072_v48  }
 0x39d   :  { %1095 = vperm.xlu0 %1827, %v1061_v37  }
 0x39e   :  { %1747 = vmatprep.mubr.bf16.mxu0 %v766_v31 }
 0x39f   :  { %1748 = vmatmul.mubr.bf16.gmra.mxu0 %v767_v32 }
 0x3a0   :  { %1799 = vmatprep.mubr.msk.bf16.mxu0 %vm1909_vm0, %v1908_v11 }
 0x3a1   :  { %1105 = vperm.xlu0 %1827, %v1063_v39  }
 0x3a5   :  { %1115 = vperm.xlu0 %1827, %v1065_v41  }
 0x3a9   :  { %1125 = vperm.xlu0 %1827, %v1067_v43  }
 0x3ad   :  { %1135 = vperm.xlu0 %1827, %v1069_v45  }
 0x3b1   :  { %1145 = vperm.xlu0 %1827, %v1071_v47  }
 0x3fb   :  { %v1076_v25 = vpop.permute.xlu0 %1075  ;;  %v1086_v26 = vpop.permute.xlu1 %1085 }
 0x3ff   :  { %v1091_v29 = vpop.permute.xlu1 %1090 }
 0x403   :  { %v1101_v39 = vpop.permute.xlu1 %1100 }
 0x414   :  { %v1081_v27 = vpop.permute.xlu0 %1080 }
 0x418   :  { %v1096_v35 = vpop.permute.xlu0 %1095 }
 0x41c   :  { %v1106_v48 = vpop.permute.xlu0 %1105 }
 0x447   :  { %v1737_v49 = vpop.f32.mrf.mxu0 }
 0x449   :  { %v867_v50 = vpop.f32.mrf.mxu0 }
 0x44b   :  { %v1738_v51 = vpop.f32.mrf.mxu0 }
 0x44c   :  { %v931_v8 = vpack.c.bf16 %v1738_v51, %v1737_v49 }
 0x44d   :  { %v870_v52 = vpop.f32.mrf.mxu0 }
 0x44e   :  { %v930_v9 = vpack.c.bf16 %v870_v52, %v867_v50 }
 0x44f   :  { %v1741_v53 = vpop.f32.mrf.mxu0 }
 0x451   :  { %v883_v54 = vpop.f32.mrf.mxu0 }
 0x453   :  { %v1742_v55 = vpop.f32.mrf.mxu0 }
 0x454   :  { %v933_v6 = vpack.c.bf16 %v1742_v55, %v1741_v53 }
 0x455   :  { %v886_v56 = vpop.f32.mrf.mxu0 }
 0x456   :  { %v932_v7 = vpack.c.bf16 %v886_v56, %v883_v54  ;;  %v1111_v54 = vpop.permute.xlu1 %1110 }
 0x457   :  { %v1745_v57 = vpop.f32.mrf.mxu0 }
 0x459   :  { %v899_v59 = vpop.f32.mrf.mxu0 }
 0x45b   :  { %v1746_v58 = vpop.f32.mrf.mxu0 }
 0x45c   :  { %v935_v3 = vpack.c.bf16 %v1746_v58, %v1745_v57 }
 0x45d   :  { %v902_v60 = vpop.f32.mrf.mxu0 }
 0x45e   :  { %v934_v5 = vpack.c.bf16 %v902_v60, %v899_v59 }
 0x45f   :  { %v1749_v61 = vpop.f32.mrf.mxu0 }
 0x461   :  { %v915_v62 = vpop.f32.mrf.mxu0 }
 0x463   :  { %v1750_v63 = vpop.f32.mrf.mxu0 }
 0x464   :  { %v937_v0 = vpack.c.bf16 %v1750_v63, %v1749_v61 }
 0x465   :  { %v918_v1 = vpop.f32.mrf.mxu0 }
 0x466   :  { %v936_v2 = vpack.c.bf16 %v918_v1, %v915_v62  ;;  %1751 = vmatprep.subr.bf16.mxu1 %v937_v0  ;;  %v1116_v1 = vpop.permute.xlu0 %1115 }
 0x467   :  { %1752 = vmatpush3.bf16.msra.mxu1 %v937_v0 }
 0x468   :  { %1753 = vmatprep.subr.bf16.mxu1 %v936_v2 }
 0x46b   :  { %1754 = vmatpush3.bf16.msra.mxu1 %v936_v2 }
 0x46c   :  { %1755 = vmatprep.subr.bf16.mxu1 %v935_v3 }
 0x46f   :  { %1756 = vmatpush3.bf16.msra.mxu1 %v935_v3 }
 0x470   :  { %1757 = vmatprep.subr.bf16.mxu1 %v934_v5 }
 0x473   :  { %1758 = vmatpush3.bf16.msra.mxu1 %v934_v5 }
 0x474   :  { %1759 = vmatprep.subr.bf16.mxu1 %v933_v6 }
 0x477   :  { %1760 = vmatpush3.bf16.msra.mxu1 %v933_v6 }
 0x478   :  { %1761 = vmatprep.subr.bf16.mxu1 %v932_v7 }
 0x47b   :  { %1762 = vmatpush3.bf16.msra.mxu1 %v932_v7 }
 0x47c   :  { %1763 = vmatprep.subr.bf16.mxu1 %v931_v8 }
 0x47f   :  { %1764 = vmatpush3.bf16.msra.mxu1 %v931_v8  ;;  %v1121_v8 = vpop.permute.xlu1 %1120 }
 0x480   :  { %1765 = vmatprep.subr.bf16.mxu1 %v930_v9 }
 0x483   :  { %1766 = vmatpush3.bf16.msra.mxu1 %v930_v9 }
 0x484   :  { %1803 = vmatprep.subr.bf16.mxu1 %v1908_v11 }
 0x486   :  { %1768 = vmatmul.mubr.bf16.vlgmr.msra.gmra.mxu1 %v2029_v14  ;;  %v1870_v14 = vld [vmem:[%s2300_s9 + $0x30] sm:$0xff]  }
 0x487   :  { %1771 = vmatprep.mubr.bf16.mxu1 %v2034_v15  ;;  %1786 = vmatpush3.bf16.msra.mxu0 %v1870_v14  ;;  %v1871_v15 = vld [vmem:[%s2300_s9 + $0x28] sm:$0xff]  }
 0x488   :  { %1787 = vmatprep.subr.bf16.mxu0 %v1908_v11  ;;  %1804 = vmatpush3.bf16.msra.mxu1 %v1877_v12 }
 0x489   :  { %1805 = vmatprep.subr.bf16.mxu1 %v1908_v11 }
 0x48b   :  { %1788 = vmatpush3.bf16.msra.mxu0 %v1871_v15 }
 0x48c   :  { %1789 = vmatprep.subr.bf16.mxu0 %v1908_v11  ;;  %1806 = vmatpush3.bf16.msra.mxu1 %v1878_v13  ;;  %v1126_v13 = vpop.permute.xlu0 %1125 }
 0x48d   :  { %1807 = vmatprep.subr.bf16.mxu1 %v1908_v11 }
 0x48e   :  { %1772 = vmatmul.mubr.bf16.gmra.mxu1 %v2044_v17  ;;  %v1872_v17 = vld [vmem:[%s2300_s9 + $0x20] sm:$0xff]  }
 0x48f   :  { %1775 = vmatprep.mubr.bf16.mxu1 %v2049_v18  ;;  %1790 = vmatpush3.bf16.msra.mxu0 %v1872_v17  ;;  %v1873_v18 = vld [vmem:[%s2300_s9 + $0x18] sm:$0xff]  }
 0x490   :  { %1791 = vmatprep.subr.bf16.mxu0 %v1908_v11  ;;  %1808 = vmatpush3.bf16.msra.mxu1 %v1879_v16 }
 0x491   :  { %1809 = vmatprep.subr.bf16.mxu1 %v1908_v11 }
 0x493   :  { %1792 = vmatpush3.bf16.msra.mxu0 %v1873_v18 }
 0x494   :  { %1793 = vmatprep.subr.bf16.mxu0 %v1908_v11  ;;  %1810 = vmatpush3.bf16.msra.mxu1 %v1880_v22 }
 0x495   :  { %1811 = vmatprep.subr.bf16.mxu1 %v1908_v11 }
 0x496   :  { %1776 = vmatmul.mubr.bf16.gmra.mxu1 %v2056_v19  ;;  %v1874_v19 = vld [vmem:[%s2300_s9 + $0x10] sm:$0xff]  }
 0x497   :  { %1779 = vmatprep.mubr.bf16.mxu1 %v2061_v20  ;;  %1794 = vmatpush3.bf16.msra.mxu0 %v1874_v19  ;;  %v1875_v20 = vld [vmem:[%s2300_s9 + $0x8] sm:$0xff]  }
 0x498   :  { %1795 = vmatprep.subr.bf16.mxu0 %v1908_v11  ;;  %1812 = vmatpush3.bf16.msra.mxu1 %v1881_v23 }
 0x499   :  { %1813 = vmatprep.subr.bf16.mxu1 %v1908_v11 }
 0x49b   :  { %1796 = vmatpush3.bf16.msra.mxu0 %v1875_v20 }
 0x49c   :  { %1797 = vmatprep.subr.bf16.mxu0 %v1908_v11  ;;  %1814 = vmatpush3.bf16.msra.mxu1 %v1882_v24 }
 0x49d   :  { %1815 = vmatprep.subr.bf16.mxu1 %v1908_v11 }
 0x49e   :  { %1780 = vmatmul.mubr.bf16.gmra.mxu1 %v2068_v21  ;;  %v1876_v21 = vld [vmem:[%s2300_s9] sm:$0xff]  }
 0x49f   :  { %1819 = vmatprep.mubr.msk.bf16.mxu1 %vm1909_vm0, %v1908_v11  ;;  %1798 = vmatpush3.bf16.msra.mxu0 %v1876_v21 }
 0x546   :  { %v1769_v28 = vpop.f32.mrf.mxu1 }
 0x547   :  { %v987_v4 = vadd.f32 %v1769_v28, %v2257_v30 }
 0x548   :  { %v978_v31 = vpop.f32.mrf.mxu1 }
 0x549   :  { %v979_v32 = vadd.f32 %v2257_v30, %v978_v31  ;;  %v1043_v41 = vmax.f32 %v987_v4, 0.0 }
 0x54a   :  { %v1770_v33 = vpop.f32.mrf.mxu1 }
 0x54b   :  { %v1041_v36 = vmax.f32 %v979_v32, 0.0  ;;  %v990_v37 = vadd.f32 %v1770_v33, %v2257_v30  ;;  %v1155_v50 = vmul.f32 %v1086_v26, %v1043_v41  ;;  %v1131_v26 = vpop.permute.xlu1 %1130 }
 0x54c   :  { %v981_v34 = vpop.f32.mrf.mxu1 }
 0x54d   :  { %v982_v38 = vadd.f32 %v2257_v30, %v981_v34  ;;  %v1153_v44 = vmul.f32 %v1076_v25, %v1041_v36  ;;  %v1044_v45 = vmax.f32 %v990_v37, 0.0  ;;  %v1136_v37 = vpop.permute.xlu0 %1135 }
 0x54e   :  { %v1773_v40 = vpop.f32.mrf.mxu1 }
 0x54f   :  { %v1042_v42 = vmax.f32 %v982_v38, 0.0  ;;  %v1003_v52 = vadd.f32 %v1773_v40, %v2257_v30  ;;  %v1156_v56 = vmul.f32 %v1091_v29, %v1044_v45 }
 0x550   :  { %v994_v43 = vpop.f32.mrf.mxu1 }
 0x551   :  { %v1154_v46 = vmul.f32 %v1081_v27, %v1042_v42  ;;  %v995_v47 = vadd.f32 %v2257_v30, %v994_v43  ;;  %v1047_v61 = vmax.f32 %v1003_v52, 0.0  ;;  %v1141_v43 = vpop.permute.xlu1 %1140 }
 0x552   :  { %v1774_v49 = vpop.f32.mrf.mxu1 }
 0x553   :  { %v1169_v51 = vadd.f32 %v1154_v46, %v1153_v44  ;;  %v1045_v53 = vmax.f32 %v995_v47, 0.0  ;;  %v1006_v59 = vadd.f32 %v1774_v49, %v2257_v30  ;;  %v1159_v10 = vmul.f32 %v1106_v48, %v1047_v61 }
 0x554   :  { %v997_v55 = vpop.f32.mrf.mxu1 }
 0x555   :  { %v1170_v57 = vadd.f32 %v1169_v51, %v1155_v50  ;;  %v998_v58 = vadd.f32 %v2257_v30, %v997_v55  ;;  %v1157_v62 = vmul.f32 %v1096_v35, %v1045_v53  ;;  %v1048_v5 = vmax.f32 %v1006_v59, 0.0  ;;  %v1146_v51 = vpop.permute.xlu0 %1145 }
 0x556   :  { %v1777_v60 = vpop.f32.mrf.mxu1 }
 0x557   :  { %v1171_v63 = vadd.f32 %v1170_v57, %v1156_v56  ;;  %v1046_v0 = vmax.f32 %v998_v58, 0.0  ;;  %v1019_v15 = vadd.f32 %v1777_v60, %v2257_v30  ;;  %v1160_v19 = vmul.f32 %v1111_v54, %v1048_v5  ;;  %v1151_v54 = vpop.permute.xlu1 %1150 }
 0x558   :  { %v1010_v2 = vpop.f32.mrf.mxu1 }
 0x559   :  { %v1172_v3 = vadd.f32 %v1171_v63, %v1157_v62  ;;  %v1158_v6 = vmul.f32 %v1101_v39, %v1046_v0  ;;  %v1011_v7 = vadd.f32 %v2257_v30, %v1010_v2  ;;  %v1051_v22 = vmax.f32 %v1019_v15, 0.0  ;;  %v1883_v0 = vld [vmem:[%s2302_s11 + $0x8] sm:$0xff]   ;;  %v1207_v2 = vld [vmem:[%s2301_s10] sm:$0x1]  ;;  %s1885_s10 = scalar_lea.vmem %s1411_s27, 16 }
 0x55a   :  { %v1778_v9 = vpop.f32.mrf.mxu1  ;;  %1816 = vmatpush3.bf16.msra.mxu1 %v1883_v0  ;;  %p1886_p0 = scmp.ne.s32.totalorder %s1411_s27, %s1885_s10 }
 0x55b   :  { %v1173_v14 = vadd.f32 %v1172_v3, %v1158_v6  ;;  %v1049_v17 = vmax.f32 %v1011_v7, 0.0  ;;  %v1022_v21 = vadd.f32 %v1778_v9, %v2257_v30  ;;  %v1163_v4 = vmul.f32 %v1126_v13, %v1051_v22  ;;  %1817 = vmatprep.subr.bf16.mxu1 %v1908_v11  ;;  %v1314_v11 = vld [vmem:[%s2303_s12] sm:$0x1] }
 0x55c   :  { %v1013_v18 = vpop.f32.mrf.mxu1 }
 0x55d   :  { %v1174_v20 = vadd.f32 %v1173_v14, %v1159_v10  ;;  %v1014_v12 = vadd.f32 %v2257_v30, %v1013_v18  ;;  %v1161_v23 = vmul.f32 %v1116_v1, %v1049_v17  ;;  %v1052_v29 = vmax.f32 %v1022_v21, 0.0  ;;  %v1884_v1 = vld [vmem:[%s2302_s11] sm:$0xff]   ;;  %s1889_s11 = scalar_lea.vmem %s1411_s27, 32 }
 0x55e   :  { %v1781_v16 = vpop.f32.mrf.mxu1  ;;  %1818 = vmatpush3.bf16.msra.mxu1 %v1884_v1  ;;  %p1891_p2 = scmp.lt.s32.totalorder %s1889_s11, %s1885_s10 }
 0x55f   :  { %v1175_v24 = vadd.f32 %v1174_v20, %v1160_v19  ;;  %v1050_v25 = vmax.f32 %v1014_v12, 0.0  ;;  %v1035_v34 = vadd.f32 %v1781_v16, %v2257_v30  ;;  %v1164_v39 = vmul.f32 %v1131_v26, %v1052_v29 }
 0x560   :  { %v1026_v27 = vpop.f32.mrf.mxu1  ;;  %p1892_p3 = por %p1891_p2, %p1890_p1 }
 0x561   :  { %v1176_v28 = vadd.f32 %v1175_v24, %v1161_v23  ;;  %v1162_v31 = vmul.f32 %v1121_v8, %v1050_v25  ;;  %v1027_v32 = vadd.f32 %v2257_v30, %v1026_v27  ;;  %v1055_v44 = vmax.f32 %v1035_v34, 0.0 }
 0x562   :  { %v1782_v33 = vpop.f32.mrf.mxu1  ;;  %p1893_p4 = pnand %p1892_p3, %p1886_p0 }
 0x563   :  { %v1177_v35 = vadd.f32 %v1176_v28, %v1162_v31  ;;  %v1053_v36 = vmax.f32 %v1027_v32, 0.0  ;;  %v1038_v41 = vadd.f32 %v1782_v33, %v2257_v30  ;;  %v1167_v52 = vmul.f32 %v1146_v51, %v1055_v44 }
 0x564   :  { %v1029_v38 = vpop.f32.mrf.mxu1 }
 0x565   :  { %v1178_v40 = vadd.f32 %v1177_v35, %v1163_v4  ;;  %v1030_v42 = vadd.f32 %v2257_v30, %v1029_v38  ;;  %v1165_v45 = vmul.f32 %v1136_v37, %v1053_v36  ;;  %v1056_v49 = vmax.f32 %v1038_v41, 0.0 }
 0x567   :  { %v1179_v46 = vadd.f32 %v1178_v40, %v1164_v39  ;;  %v1054_v47 = vmax.f32 %v1030_v42, 0.0  ;;  %v1168_v55 = vmul.f32 %v1151_v54, %v1056_v49 }
 0x569   :  { %v1180_v48 = vadd.f32 %v1179_v46, %v1165_v45  ;;  %v1166_v50 = vmul.f32 %v1141_v43, %v1054_v47 }
 0x56b   :  { %v1181_v53 = vadd.f32 %v1180_v48, %v1166_v50 }
 0x56d   :  { %v1182_v56 = vadd.f32 %v1181_v53, %v1167_v52 }
 0x56f   :  { %v1183_v57 = vadd.f32 %v1182_v56, %v1168_v55 }
 0x571   :  { %v1184_v59 = vrot.slane %v1183_v57, 4 }
 0x573   :  { %v1185_v58 = vadd.f32 %v1184_v59, %v1183_v57 }
 0x575   :  { %v1186_v60 = vrot.slane %v1185_v58, 2 }
 0x577   :  { %v1187_v61 = vadd.f32 %v1186_v60, %v1185_v58 }
 0x579   :  { %v1188_v30 = vrot.slane %v1187_v61, 1 }
 0x57b   :  { %v1189_v62 = vadd.f32 %v1188_v30, %v1187_v61 }
 0x57d   :  { %v1190_v63 = vpack.c.bf16 %v1189_v62, %v1189_v62 }
 0x57f   :  { %1800 = vmatmul.mubr.bf16.vlgmr.msra.gmra.mxu0 %v1190_v63 }
 0x63f   :  { %v1290_v3 = vpop.f32.mrf.mxu0 }
 0x640   :  { %v1291_v5 = vadd.f32 %v1290_v3, %v1207_v2 }
 0x641   :  { %v1801_v6 = vpop.f32.mrf.mxu0 }
 0x642   :  { %v1296_v7 = vmax.f32 %v1291_v5, 0.0 }
 0x643   :  { %v1293_v8 = vpop.f32.mrf.mxu0 }
 0x644   :  { %v1297_v9 = vpack.c.bf16 %v1296_v7, %v1296_v7 }
 0x645   :  { %v1802_v10 = vpop.f32.mrf.mxu0 }
 0x646   :  { %1820 = vmatmul.mubr.bf16.vlgmr.msra.gmra.mxu1 %v1297_v9 }
 0x706   :  { %v1397_v14 = vpop.f32.mrf.mxu1 }
 0x707   :  { %v1398_v15 = vadd.f32 %v1397_v14, %v1314_v11 }
 0x708   :  { %v1821_v17 = vpop.f32.mrf.mxu1 }
 0x709   :  { %1403 = vst [vmem:[#allocation2] sm:$0x1] %v1398_v15 }
 0x70a   :  { %v1400_v18 = vpop.f32.mrf.mxu1 }
 0x70b   :  { %1896 = shalt.err (!%p1893_p4)
}
 0x70c   :  { %1413 = dma.vmem_to_hbm [thread:$0]  %s1411_s27, 16, %s2304_s13, [#allocation3]   ;;  %v1822_v19 = vpop.f32.mrf.mxu1 }
 0x70d   :  { %1905 = dma.done.wait [#allocation3], 16  }
 0x70e   :  { %1906 = vsyncadd [#allocation3], 4294967280 }
 0x70f   :  { %1417 = vsyncpa [#allocation3], 1 }

</bundles_post_ra>
